<compile_context>
chip_gen: v5e
topology: v5e:2x2
jax: 0.10.0
libtpu: 0.0.40
codegen_flags: <defaults>
</compile_context>

<pallas_src>
import functools

import jax
import jax.numpy as jnp
from jax.experimental import pallas as pl
from jax.experimental.pallas import tpu as pltpu


_SINGLE_TILE_MAX = 1024   # one grid step up to this batch size
_TILE_CAP = 2048          # max rows per grid step beyond that


def _round_up(x, m):
    return ((x + m - 1) // m) * m


def dqn_kernel(x_ref, w1_ref, b1_ref, w2_ref, b2_ref, out_ref):
    hp = jax.lax.Precision.HIGHEST
    # layer1: x @ W1 + b1, ReLU  (f32 accumulate on the MXU)
    h = jnp.dot(x_ref[...], w1_ref[...],
                preferred_element_type=jnp.float32, precision=hp)
    h = jnp.maximum(h + b1_ref[...], 0.0)          # b1 is (1, H), broadcasts over rows
    # layer2, emitted transposed: out[a, b] = sum_h h[b, h] * W2[h, a] + b2[a]
    # 'ha,bh->ab' puts the batch on the 128-lane axis -> dense, unmasked stores.
    o_t = jnp.einsum("ha,bh->ab", w2_ref[...], h,
                     preferred_element_type=jnp.float32, precision=hp)
    out_ref[...] = (o_t + b2_ref[...]).astype(out_ref.dtype)   # b2 is (A, 1)


@functools.partial(jax.jit, static_argnames=("tile_cap",))
def dqn_forward(x, w1, b1, w2, b2, *, tile_cap=_TILE_CAP):
    """x: (B, n_obs) f32; w1: (n_obs, H); b1: (H,); w2: (H, A); b2: (A,)."""
    B, n_obs = x.shape
    H = w1.shape[1]
    A = w2.shape[1]
    b1_2d = b1.reshape(1, H)
    b2_2d = b2.reshape(A, 1)

    # Tiling: no jnp.pad -- Pallas handles the ragged last block.
    if B <= _SINGLE_TILE_MAX:
        # Single full-extent tile (full-dim blocks are exempt from the (8,128)
        # divisibility rule), minimum per-grid-step overhead.
        tb = B
        grid = (1,)
    else:
        # >= 2 steps so the "parallel" batch axis can shard over v7x's 2 TCs;
        # tile rows are a multiple of 128 so the transposed (A, tb) store is
        # lane-dense on every full block.
        n_steps = max(2, pl.cdiv(B, tile_cap))
        tb = _round_up(pl.cdiv(B, n_steps), 128)
        grid = (pl.cdiv(B, tb),)

    out_t = pl.pallas_call(
        dqn_kernel,
        out_shape=jax.ShapeDtypeStruct((A, B), x.dtype),
        grid=grid,
        in_specs=[
            pl.BlockSpec((tb, n_obs), lambda i: (i, 0)),   # x: walks the batch
            pl.BlockSpec((n_obs, H), lambda i: (0, 0)),    # W1: VMEM-resident
            pl.BlockSpec((1, H), lambda i: (0, 0)),        # b1
            pl.BlockSpec((H, A), lambda i: (0, 0)),        # W2
            pl.BlockSpec((A, 1), lambda i: (0, 0)),        # b2 (column vector)
        ],
        out_specs=pl.BlockSpec((A, tb), lambda i: (0, i)),  # transposed, lane-dense
        compiler_params=pltpu.CompilerParams(
            dimension_semantics=("parallel",),              # v7x: shard batch over 2 TCs
        ),
    )(x, w1, b1_2d, w2, b2_2d)

    # Back to the nn.Module (B, A) layout; the array is tiny (B x 4 f32).
    return out_t.T


def init_linear_params(key, fan_in, fan_out):
    """Deterministic init matching nn.Linear's U(-1/sqrt(fan_in), 1/sqrt(fan_in))."""
    kw, kb = jax.random.split(key)
    bound = 1.0 / jnp.sqrt(fan_in)
    # stored as [in_features, out_features] (transposed vs PyTorch storage)
    w = jax.random.uniform(kw, (fan_in, fan_out), jnp.float32, -bound, bound)
    b = jax.random.uniform(kb, (fan_out,), jnp.float32, -bound, bound)
    return w, b


def _ref(x, w1, b1, w2, b2):
    hp = jax.lax.Precision.HIGHEST
    h = jnp.maximum(jnp.dot(x, w1, precision=hp) + b1, 0.0)
    return jnp.dot(h, w2, precision=hp) + b2


if __name__ == "__main__":
    # Shapes implied by the module: n_observations=16, hidden_size=32, n_actions=4.
    n_observations, hidden_size, n_actions = 16, 32, 4

    key = jax.random.PRNGKey(0)
    k1, k2, kx_a, kx_b, kx_c = jax.random.split(key, 5)

    w1, b1 = init_linear_params(k1, n_observations, hidden_size)
    w2, b2 = init_linear_params(k2, hidden_size, n_actions)

    # 1) Tiny batch (online action selection): single full-extent tile.
    x = jax.random.normal(kx_a, (2, n_observations), jnp.float32)
    out = jax.block_until_ready(dqn_forward(x, w1, b1, w2, b2))
    assert out.shape == (2, n_actions)
    assert jnp.allclose(out, _ref(x, w1, b1, w2, b2), atol=1e-5, rtol=1e-5)

    # 2) Replay-buffer batch, not a multiple of 8/128: still one tile, no pad copy.
    x = jax.random.normal(kx_b, (1000, n_observations), jnp.float32)
    out = jax.block_until_ready(dqn_forward(x, w1, b1, w2, b2))
    assert out.shape == (1000, n_actions)
    assert jnp.allclose(out, _ref(x, w1, b1, w2, b2), atol=1e-5, rtol=1e-5)

    # 3) Large batch: >= 2 parallel grid steps (v7x megacore) with a ragged
    #    last block handled by Pallas (no jnp.pad, tail rows never written).
    x = jax.random.normal(kx_c, (2500, n_observations), jnp.float32)
    out = jax.block_until_ready(dqn_forward(x, w1, b1, w2, b2))
    assert out.shape == (2500, n_actions)
    assert jnp.allclose(out, _ref(x, w1, b1, w2, b2), atol=1e-5, rtol=1e-5)

    print("KERNEL_OK")
</pallas_src>

<mosaic_0001>
module attributes {stable_mosaic.version = 11 : i64} {
  func.func @dqn_kernel(%arg0: i32, %arg1: memref<2x16xf32, #tpu.memory_space<vmem>>, %arg2: memref<16x32xf32, #tpu.memory_space<vmem>>, %arg3: memref<1x32xf32, #tpu.memory_space<vmem>>, %arg4: memref<32x4xf32, #tpu.memory_space<vmem>>, %arg5: memref<4x1xf32, #tpu.memory_space<vmem>>, %arg6: memref<4x2xf32, #tpu.memory_space<vmem>>) attributes {dimension_semantics = [#tpu.dimension_semantics<parallel>], iteration_bounds = array<i64: 1>, scalar_prefetch = 0 : i64, scratch_operands = 0 : i64, tpu.core_type = #tpu.core_type<tc>, window_params = [{transform_indices = @transform_0, window_bounds = array<i64: 2, 16>}, {pipeline_mode = #tpu.pipeline_mode<synchronous>, transform_indices = @transform_1, window_bounds = array<i64: 16, 32>}, {pipeline_mode = #tpu.pipeline_mode<synchronous>, transform_indices = @transform_2, window_bounds = array<i64: 1, 32>}, {pipeline_mode = #tpu.pipeline_mode<synchronous>, transform_indices = @transform_3, window_bounds = array<i64: 32, 4>}, {pipeline_mode = #tpu.pipeline_mode<synchronous>, transform_indices = @transform_4, window_bounds = array<i64: 4, 1>}, {transform_indices = @transform_5, window_bounds = array<i64: 4, 2>}]} {
    %c0 = arith.constant 0 : index
    %c0_0 = arith.constant 0 : index
    %0 = vector.load %arg1[%c0, %c0_0] : memref<2x16xf32, #tpu.memory_space<vmem>>, vector<2x16xf32>
    %c0_1 = arith.constant 0 : index
    %c0_2 = arith.constant 0 : index
    %1 = vector.load %arg2[%c0_1, %c0_2] : memref<16x32xf32, #tpu.memory_space<vmem>>, vector<16x32xf32>
    %cst = arith.constant dense<0.000000e+00> : vector<2x32xf32>
    %2 = tpu.matmul %0, %1, %cst {dimension_numbers = #tpu.dot_dimension_numbers<[1], [0], [0], [1], [0, 0, 1, 1], [], []>, precision = #tpu.contract_precision<fp32>} : vector<2x16xf32>, vector<16x32xf32>, vector<2x32xf32> -> vector<2x32xf32>
    %c0_3 = arith.constant 0 : index
    %c0_4 = arith.constant 0 : index
    %3 = vector.load %arg3[%c0_3, %c0_4] : memref<1x32xf32, #tpu.memory_space<vmem>>, vector<1x32xf32>
    %4 = vector.broadcast %3 : vector<1x32xf32> to vector<2x32xf32>
    %5 = arith.addf %2, %4 : vector<2x32xf32>
    %cst_5 = arith.constant 0.000000e+00 : f32
    %6 = vector.broadcast %cst_5 : f32 to vector<2x32xf32>
    %7 = arith.maximumf %5, %6 : vector<2x32xf32>
    %c0_6 = arith.constant 0 : index
    %c0_7 = arith.constant 0 : index
    %8 = vector.load %arg4[%c0_6, %c0_7] : memref<32x4xf32, #tpu.memory_space<vmem>>, vector<32x4xf32>
    "tpu.trace_start"() <{level = 10 : i32, message = "ha,bh->ab"}> : () -> ()
    %cst_8 = arith.constant dense<0.000000e+00> : vector<4x2xf32>
    %9 = tpu.matmul %8, %7, %cst_8 {dimension_numbers = #tpu.dot_dimension_numbers<[0], [1], [1], [0], [0, 1, 1, 0], [], []>, precision = #tpu.contract_precision<fp32>} : vector<32x4xf32>, vector<2x32xf32>, vector<4x2xf32> -> vector<4x2xf32>
    "tpu.trace_stop"() : () -> ()
    %c0_9 = arith.constant 0 : index
    %c0_10 = arith.constant 0 : index
    %10 = vector.load %arg5[%c0_9, %c0_10] : memref<4x1xf32, #tpu.memory_space<vmem>>, vector<4x1xf32>
    %11 = vector.broadcast %10 : vector<4x1xf32> to vector<4x2xf32>
    %12 = arith.addf %9, %11 : vector<4x2xf32>
    %c0_11 = arith.constant 0 : index
    %c0_12 = arith.constant 0 : index
    %13 = vector.load %arg6[%c0_11, %c0_12] : memref<4x2xf32, #tpu.memory_space<vmem>>, vector<4x2xf32>
    tpu.vector_store %arg6[%c0_11, %c0_12], %12 {strides = array<i32>} : memref<4x2xf32, #tpu.memory_space<vmem>>, vector<4x2xf32>,
    return
  }
  func.func @transform_0(%arg0: i32) -> (i32, i32) {
    %c0_i32 = arith.constant 0 : i32
    %c0_i32_0 = arith.constant 0 : i32
    return %arg0, %c0_i32 : i32, i32
  }
  func.func @transform_1(%arg0: i32) -> (i32, i32) {
    %c0_i32 = arith.constant 0 : i32
    %c0_i32_0 = arith.constant 0 : i32
    %c0_i32_1 = arith.constant 0 : i32
    return %c0_i32, %c0_i32_0 : i32, i32
  }
  func.func @transform_2(%arg0: i32) -> (i32, i32) {
    %c0_i32 = arith.constant 0 : i32
    %c0_i32_0 = arith.constant 0 : i32
    %c0_i32_1 = arith.constant 0 : i32
    return %c0_i32, %c0_i32_0 : i32, i32
  }
  func.func @transform_3(%arg0: i32) -> (i32, i32) {
    %c0_i32 = arith.constant 0 : i32
    %c0_i32_0 = arith.constant 0 : i32
    %c0_i32_1 = arith.constant 0 : i32
    return %c0_i32, %c0_i32_0 : i32, i32
  }
  func.func @transform_4(%arg0: i32) -> (i32, i32) {
    %c0_i32 = arith.constant 0 : i32
    %c0_i32_0 = arith.constant 0 : i32
    %c0_i32_1 = arith.constant 0 : i32
    return %c0_i32, %c0_i32_0 : i32, i32
  }
  func.func @transform_5(%arg0: i32) -> (i32, i32) {
    %c0_i32 = arith.constant 0 : i32
    %c0_i32_0 = arith.constant 0 : i32
    return %c0_i32, %arg0 : i32, i32
  }
}

</mosaic_0001>

<bundles_post_ra>
// kernel: dqn_forward.1
= control target key start
LH: loop header
LB: loop body
LE: loop exit
PB: predicated region body
PF: predicated region fallthrough
CT: control target
= control target key end

     0   :  { %vm27_vm0 = vcmask 130048   ;;  %vm233_vm1 = vcmask 261120   ;;  %v397_v40 = vmov 0   ;;  %vm386_vm2 = vcmask 11264   ;;  %s460_s3 = inlined_call_operand.vmem [shape: f32[32,4], index: 3, kind: input, shape index: {}]   ;;  %s461_s1 = inlined_call_operand.vmem [shape: f32[16,32], index: 1, kind: input, shape index: {}]   ;;  %s462_s0 = inlined_call_operand.vmem [shape: f32[2,16], index: 0, kind: input, shape index: {}]   ;;  %s463_s2 = inlined_call_operand.vmem [shape: f32[1,32], index: 2, kind: input, shape index: {}]   ;;  %s464_s4 = inlined_call_operand.vmem [shape: f32[4,1], index: 4, kind: input, shape index: {}]   ;;  %s465_s5 = inlined_call_operand.vmem [shape: f32[4,2], index: 5, kind: output, shape index: {}]  }
   0x1   :  { %v191_v0 = vld [vmem:[%s460_s3] sm:$0xff]  ;;  %v22_v1 = vld [vmem:[%s461_s1 + $0x8] sm:$0xff]  ;;  %v193_v21 = vld [vmem:[%s460_s3 + $0x10] sm:$0xff]  ;;  %394 = vset.pattern.permute.xlu1 %v397_v40 }
   0x2   :  { %201 = vxpose.xlu0.b32.start [1/4] (short) (narrow) %v191_v0, 8  ;;  %v45_v2 = vand.u32 4294901760, %v22_v1  ;;  %v21_v3 = vld [vmem:[%s461_s1] sm:$0xff]  ;;  %v192_v12 = vld [vmem:[%s460_s3 + $0x8] sm:$0xff]  ;;  %v194_v22 = vld [vmem:[%s460_s3 + $0x18] sm:$0xff] }
   0x3   :  { %v20_v4 = vld [vmem:[%s462_s0] sm:$0x3]  ;;  %v47_v5 = vand.u32 4294901760, %v21_v3 }
   0x4   :  { %v29_v6 = vsel %vm27_vm0, %v20_v4, 0  ;;  %v73_v7 = vsub.f32 %v22_v1, %v45_v2  ;;  %46 = vmatpush.msra.mxu0 %v45_v2  ;;  %130 = vmatpush.msra.mxu3 %v45_v2  ;;  %v396_v23 = vld [vmem:[%s463_s2] ss:$0 sm:$0xff] }
   0x5   :  { %v49_v8 = vand.u32 4294901760, %v29_v6  ;;  %v79_v9 = vsub.f32 %v21_v3, %v47_v5  ;;  %v195_v38 = vld [vmem:[%s464_s4] sm:$0xf] }
   0x6   :  { %105 = vmatpush.msra.mxu2 %v73_v7  ;;  %48 = vmatpush.msra.mxu0 %v47_v5  ;;  %v74_v11 = vand.u32 4294901760, %v73_v7 }
   0x7   :  { %v50_v10 = vsub.f32 %v29_v6, %v49_v8  ;;  %132 = vmatpush.msra.mxu3 %v47_v5  ;;  %v80_v13 = vand.u32 4294901760, %v79_v9  ;;  %198 = vperm.xlu1 %394, %v195_v38  }
   0x8   :  { %108 = vmatpush.msra.mxu2 %v79_v9  ;;  %v75_v14 = vsub.f32 %v73_v7, %v74_v11  ;;  %157 = vmatpush.msrb.mxu0 %v74_v11 }
   0x9   :  { %v51_v15 = vand.u32 4294901760, %v50_v10  ;;  %111 = vmatmul.f32.vlgmr.msra.gmra.mxu2 %v50_v10  ;;  %v81_v16 = vsub.f32 %v79_v9, %v80_v13 }
   0xa   :  { %202 = vxpose.xlu0.b32.cont [2/4] (short) (narrow) %v192_v12, 8  ;;  %v76_v17 = vand.u32 4294901760, %v75_v14  ;;  %161 = vmatpush.msrb.mxu0 %v80_v13 }
   0xb   :  { %v52_v18 = vsub.f32 %v50_v10, %v51_v15  ;;  %136 = vmatmul.f32.vlgmr.msra.gmra.mxu3 %v51_v15  ;;  %v82_v19 = vand.u32 4294901760, %v81_v16 }
   0xc   :  { %77 = vmatpush.msra.mxu1 %v76_v17 }
   0xd   :  { %v53_v20 = vand.u32 4294901760, %v52_v18 }
   0xe   :  { %83 = vmatpush.msra.mxu1 %v82_v19 }
   0xf   :  { %54 = vmatmul.f32.vlgmr.msra.gmra.mxu0 %v53_v20  ;;  %85 = vmatmul.f32.vlgmr.msra.gmra.mxu1 %v49_v8 }
  0x10   :  { %182 = vmatpush.msrb.mxu1 %v45_v2 }
  0x12   :  { %203 = vxpose.xlu0.b32.cont [3/4] (short) (narrow) %v193_v21, 8  ;;  %184 = vmatpush.msrb.mxu1 %v47_v5 }
  0x17   :  { %163 = vmatmul.f32.vlgmr.msrb.gmra.mxu0 %v49_v8  ;;  %186 = vmatmul.f32.vlgmr.msrb.gmra.mxu1 %v49_v8 }
  0x1a   :  { %204 = vxpose.xlu0.b32.end [4/4] (short) (narrow) %v194_v22, 8 }
  0x79   :  { %v199_v52 = vpop.permute.xlu1 %198 }
  0x81   :  { %395 = vset.pattern.permute.xlu0 %v397_v40 }
  0x8c   :  { %v55_v24 = vpop.f32.mrf.mxu0  ;;  %v86_v26 = vpop.f32.mrf.mxu1 }
  0x8d   :  { %v56_v25 = vadd.f32 %v396_v23, %v55_v24  ;;  %v112_v27 = vpop.f32.mrf.mxu2 }
  0x8e   :  { %v137_v29 = vpop.f32.mrf.mxu3 }
  0x8f   :  { %v87_v28 = vadd.f32 %v86_v26, %v56_v25 }
  0x91   :  { %v113_v30 = vadd.f32 %v112_v27, %v87_v28 }
  0x93   :  { %v138_v31 = vadd.f32 %v137_v29, %v113_v30 }
  0x94   :  { %v164_v32 = vpop.f32.mrf.mxu0  ;;  %v187_v34 = vpop.f32.mrf.mxu1 }
  0x95   :  { %v165_v33 = vadd.f32 %v164_v32, %v138_v31 }
  0x97   :  { %v188_v35 = vadd.f32 %v187_v34, %v165_v33 }
  0x99   :  { %v190_v36 = vmax.f32 %v188_v35, 0.0 }
  0x9b   :  { %v238_v37 = vsel %vm233_vm1, %v190_v36, 0 }
  0x9c   :  { %v255_v39 = vand.u32 4294901760, %v238_v37 }
  0x9e   :  { %v282_v41 = vsub.f32 %v238_v37, %v255_v39  ;;  %256 = vmatpush.xpose.msrb.mxu2 %v255_v39  ;;  %332 = vmatpush.xpose.msra.mxu1 %v255_v39 }
  0xa0   :  { %v283_v42 = vand.u32 4294901760, %v282_v41  ;;  %309 = vmatpush.xpose.msra.mxu0 %v282_v41 }
  0xa2   :  { %v284_v43 = vsub.f32 %v282_v41, %v283_v42  ;;  %358 = vmatpush.xpose.msra.mxu2 %v283_v42 }
  0xa4   :  { %v285_v44 = vand.u32 4294901760, %v284_v43 }
  0xa6   :  { %286 = vmatpush.xpose.msrb.mxu3 %v285_v44  ;;  %v217_v45 = vpop.trf.xlu0 }
  0xa7   :  { %v235_v46 = vsel %vm233_vm1, %v217_v45, 0 }
  0xa8   :  { %v257_v47 = vand.u32 4294901760, %v235_v46 }
  0xaa   :  { %380 = vmatpush.xpose.msra.mxu3 %v255_v39  ;;  %v258_v48 = vsub.f32 %v235_v46, %v257_v47 }
  0xab   :  { %288 = vmatmul.f32.vlgmr.msrb.gmra.mxu3 %v257_v47 }
  0xac   :  { %v259_v49 = vand.u32 4294901760, %v258_v48  ;;  %312 = vmatmul.f32.vlgmr.msra.gmra.mxu0 %v258_v48 }
  0xae   :  { %336 = vmatmul.f32.vlgmr.msra.gmra.mxu1 %v259_v49  ;;  %v260_v50 = vsub.f32 %v258_v48, %v259_v49 }
  0xb0   :  { %v261_v51 = vand.u32 4294901760, %v260_v50 }
  0xb2   :  { %262 = vmatmul.f32.vlgmr.msrb.gmra.mxu2 %v261_v51 }
  0xb3   :  { %382 = vmatmul.f32.vlgmr.msra.gmra.mxu3 %v257_v47 }
  0xba   :  { %360 = vmatmul.f32.vlgmr.msra.gmra.mxu2 %v257_v47 }
 0x129   :  { %v313_v57 = vpop.f32.mrf.mxu0 }
 0x12b   :  { %v337_v59 = vpop.f32.mrf.mxu1 }
 0x12e   :  { %v289_v53 = vpop.f32.mrf.mxu3 }
 0x135   :  { %v263_v54 = vpop.f32.mrf.mxu2 }
 0x136   :  { %v264_v55 = vadd.f32 %v263_v54, %v199_v52  ;;  %v383_v63 = vpop.f32.mrf.mxu3 }
 0x138   :  { %v290_v56 = vadd.f32 %v289_v53, %v264_v55 }
 0x13a   :  { %v314_v58 = vadd.f32 %v313_v57, %v290_v56 }
 0x13c   :  { %v338_v60 = vadd.f32 %v337_v59, %v314_v58 }
 0x13d   :  { %v361_v61 = vpop.f32.mrf.mxu2 }
 0x13e   :  { %v362_v62 = vadd.f32 %v361_v61, %v338_v60 }
 0x140   :  { %v384_v0 = vadd.f32 %v383_v63, %v362_v62 }
 0x142   :  { %387 = vst.msk [vmem:[%s465_s5] sm:$0xf] %vm386_vm2, %v384_v0 }

</bundles_post_ra>
